<compile_context>
chip_gen: v6e
topology: v6e:2x2x1
jax: 0.10.0
libtpu: 0.0.40
codegen_flags: <defaults>
</compile_context>

<pallas_src>
import functools

import jax
import jax.numpy as jnp
from jax.experimental import pallas as pl
from jax.experimental.pallas import tpu as pltpu

_VMEM = pl.BlockSpec(memory_space=pltpu.MemorySpace.VMEM)


def _vmem_limit_bytes():
    # Re-derive the scoped-VMEM budget from the actual chip (64 MiB on v7x,
    # 128 MiB on v5e/v6e) instead of relying on the 16/32 MiB scoped default.
    try:
        cap = int(pltpu.get_tpu_info().vmem_capacity_bytes)
    except Exception:
        cap = 64 << 20
    return max(32 << 20, min(cap * 3 // 4, 112 << 20))


def _up_fused_kernel(x1_ref, x2_ref, wup_ref, bup_ref,
                     w1_ref, g1_ref, be1_ref,
                     w2_ref, g2_ref, be2_ref,
                     o_ref, *, act):
    f32 = jnp.float32
    N, L1, Cpre = x1_ref.shape
    _, L2, C2 = x2_ref.shape
    D = wup_ref.shape[1] // 2
    mid = w1_ref.shape[1]
    out_c = w2_ref.shape[1]

    # ---- ConvTranspose1d(k=2, s=2): ONE matmul for both taps, bias added once ----
    x1_2d = x1_ref[...].reshape(N * L1, Cpre)
    y = jnp.dot(x1_2d, wup_ref[...], preferred_element_type=f32) + bup_ref[...]
    y_even = y[:, :D].reshape(N, L1, D)      # -> output position 2*t
    y_odd = y[:, D:].reshape(N, L1, D)       # -> output position 2*t + 1

    # ---- interleave + F.pad fused as two selection matmuls (idle MXU) ------------
    # u_pad[n, t] = y_even[n, s] if t == left + 2s, y_odd[n, s] if t == left + 2s + 1, else 0
    left = (L2 - 2 * L1) // 2
    t_idx = jax.lax.broadcasted_iota(jnp.int32, (L2, L1), 0)
    s_idx = jax.lax.broadcasted_iota(jnp.int32, (L2, L1), 1)
    sel_even = (t_idx == left + 2 * s_idx).astype(f32)
    sel_odd = (t_idx == left + 2 * s_idx + 1).astype(f32)
    dn = (((2,), (1,)), ((0,), (0,)))
    u_pad = (jax.lax.dot_general(jnp.broadcast_to(sel_even[None], (N, L2, L1)),
                                 y_even, dn, preferred_element_type=f32)
             + jax.lax.dot_general(jnp.broadcast_to(sel_odd[None], (N, L2, L1)),
                                   y_odd, dn, preferred_element_type=f32))

    # ---- torch.cat([x2, x1_up], dim=channels) : VMEM-only lane concat ------------
    xcat = jnp.concatenate([x2_ref[...], u_pad], axis=-1)        # (N, L2, C2 + D)

    def conv3(x3, w_flat):
        # 'same' Conv1d(k=3) as halo + im2col -> ONE matmul; returns (N*L, Cout).
        n, l, c = x3.shape
        zrow = jnp.zeros((n, 1, c), f32)
        halo = jnp.concatenate([zrow, x3, zrow], axis=1)         # (n, l+2, c)
        cols = jnp.concatenate(
            [halo[:, 0:l, :], halo[:, 1:l + 1, :], halo[:, 2:l + 2, :]], axis=-1)
        return jnp.dot(cols.reshape(n * l, 3 * c), w_flat, preferred_element_type=f32)

    def bn_act(h2, gamma, beta):
        # Training-mode BatchNorm1d (biased batch variance, eps=1e-5) folded into a
        # single per-channel scale + shift, then activation. Conv biases are omitted
        # upstream because the mean subtraction here cancels them exactly.
        mean = jnp.mean(h2, axis=0, keepdims=True)
        var = jnp.mean(h2 * h2, axis=0, keepdims=True) - mean * mean
        scale = gamma * jax.lax.rsqrt(var + 1e-5)
        shift = beta - mean * scale
        h2 = h2 * scale + shift
        return jnp.maximum(h2, 0.0) if act == "relu" else jnp.tanh(h2)

    h1 = bn_act(conv3(xcat, w1_ref[...]), g1_ref[...], be1_ref[...])
    h2 = bn_act(conv3(h1.reshape(N, L2, mid), w2_ref[...]), g2_ref[...], be2_ref[...])
    o_ref[...] = h2.reshape(N, L2, out_c)


class UpPallas:
    """JAX/Pallas equivalent of `Up(pre_in_channels, post_in_channels, out_channels, act)`."""

    def __init__(self, pre_in_channels, post_in_channels, out_channels, act, key):
        if act not in ("relu", "tanh"):
            raise ValueError("Wrong activation type")
        self.act = act
        self.pre_in = pre_in_channels
        self.post_in = post_in_channels
        self.out_channels = out_channels
        d = pre_in_channels // 2
        self.d = d

        ks = jax.random.split(key, 6)
        scale = 0.1
        # ConvTranspose1d weight stored taps-first (2, Cin, D); Conv1d weights taps-first
        # (3, Cin, Cout) with the Cin order matching torch.cat([x2, x1_up]).
        w_up = scale * jax.random.normal(ks[0], (2, pre_in_channels, d), jnp.float32)
        b_up = scale * jax.random.normal(ks[1], (1, d), jnp.float32)
        w1 = scale * jax.random.normal(ks[2], (3, post_in_channels, out_channels), jnp.float32)
        w2 = scale * jax.random.normal(ks[4], (3, out_channels, out_channels), jnp.float32)
        # NOTE: Conv1d biases (b1, b2) are dropped: training-mode BatchNorm's mean
        # subtraction cancels them exactly, so they have no effect on the output.

        # Pre-packed forms consumed by the fused kernel (tiny, built once).
        self.w_up2d = jnp.concatenate([w_up[0], w_up[1]], axis=1)        # (Cpre, 2*D)
        self.b_up2 = jnp.concatenate([b_up, b_up], axis=1)               # (1, 2*D)
        self.w1_flat = w1.reshape(3 * post_in_channels, out_channels)    # im2col weight
        self.w2_flat = w2.reshape(3 * out_channels, out_channels)

        # BatchNorm affine params (deterministic, non-trivial), shape (1, C).
        oc = out_channels
        self.g1 = (1.0 + 0.1 * jnp.arange(oc, dtype=jnp.float32)).reshape(1, oc)
        self.be1 = (0.05 * jnp.arange(oc, dtype=jnp.float32)).reshape(1, oc)
        self.g2 = (1.0 - 0.05 * jnp.arange(oc, dtype=jnp.float32)).reshape(1, oc)
        self.be2 = (-0.02 * jnp.arange(oc, dtype=jnp.float32)).reshape(1, oc)

    def __call__(self, x1, x2):
        # x1: (N, pre_in, L1), x2: (N, C2, L2)  -- PyTorch NCL layout.
        N, Cp, L1 = x1.shape
        _, C2, L2 = x2.shape
        assert C2 + self.d == self.post_in, "channel mismatch with post_in_channels"

        x1_nlc = jnp.transpose(x1, (0, 2, 1)).astype(jnp.float32)
        x2_nlc = jnp.transpose(x2, (0, 2, 1)).astype(jnp.float32)

        out = pl.pallas_call(
            functools.partial(_up_fused_kernel, act=self.act),
            out_shape=jax.ShapeDtypeStruct((N, L2, self.out_channels), jnp.float32),
            in_specs=[_VMEM] * 10,
            out_specs=_VMEM,
            compiler_params=pltpu.CompilerParams(
                vmem_limit_bytes=_vmem_limit_bytes()),
        )(x1_nlc, x2_nlc, self.w_up2d, self.b_up2,
          self.w1_flat, self.g1, self.be1,
          self.w2_flat, self.g2, self.be2)

        return jnp.transpose(out, (0, 2, 1))  # back to (N, C, L)


if __name__ == "__main__":
    key = jax.random.PRNGKey(0)
    k_mod, k1, k2 = jax.random.split(key, 3)

    N = 2
    pre_in = 8                      # x1 channels
    skip_c = 4                      # x2 (skip connection) channels
    post_in = skip_c + pre_in // 2  # = 8, channels after concat
    out_c = 4
    L1, L2 = 8, 18                  # diffY = 2 -> pad (1, 1)

    up = UpPallas(pre_in, post_in, out_c, act="relu", key=k_mod)
    x1 = jax.random.normal(k1, (N, pre_in, L1), jnp.float32)
    x2 = jax.random.normal(k2, (N, skip_c, L2), jnp.float32)

    y = up(x1, x2)
    y = jax.block_until_ready(y)

    assert y.shape == (N, out_c, L2), y.shape
    assert bool(jnp.all(jnp.isfinite(y)))
    print("KERNEL_OK")
</pallas_src>

<mosaic_0001>
module attributes {stable_mosaic.version = 11 : i64} {
  func.func @_up_fused_kernel(%arg0: memref<2x8x8xf32, #tpu.memory_space<vmem>>, %arg1: memref<2x18x4xf32, #tpu.memory_space<vmem>>, %arg2: memref<8x8xf32, #tpu.memory_space<vmem>>, %arg3: memref<1x8xf32, #tpu.memory_space<vmem>>, %arg4: memref<24x4xf32, #tpu.memory_space<vmem>>, %arg5: memref<1x4xf32, #tpu.memory_space<vmem>>, %arg6: memref<1x4xf32, #tpu.memory_space<vmem>>, %arg7: memref<12x4xf32, #tpu.memory_space<vmem>>, %arg8: memref<1x4xf32, #tpu.memory_space<vmem>>, %arg9: memref<1x4xf32, #tpu.memory_space<vmem>>, %arg10: memref<2x18x4xf32, #tpu.memory_space<vmem>>) attributes {dimension_semantics = [], scalar_prefetch = 0 : i64, scratch_operands = 0 : i64, tpu.core_type = #tpu.core_type<tc>} {
    %c0 = arith.constant 0 : index
    %c0_0 = arith.constant 0 : index
    %c0_1 = arith.constant 0 : index
    %0 = vector.load %arg0[%c0, %c0_0, %c0_1] : memref<2x8x8xf32, #tpu.memory_space<vmem>>, vector<2x8x8xf32>
    %1 = vector.shape_cast %0 : vector<2x8x8xf32> to vector<16x8xf32>
    %c0_2 = arith.constant 0 : index
    %c0_3 = arith.constant 0 : index
    %2 = vector.load %arg2[%c0_2, %c0_3] : memref<8x8xf32, #tpu.memory_space<vmem>>, vector<8x8xf32>
    %cst = arith.constant dense<0.000000e+00> : vector<16x8xf32>
    %3 = tpu.matmul %1, %2, %cst {dimension_numbers = #tpu.dot_dimension_numbers<[1], [0], [0], [1], [0, 0, 1, 1], [], []>} : vector<16x8xf32>, vector<8x8xf32>, vector<16x8xf32> -> vector<16x8xf32>
    %c0_4 = arith.constant 0 : index
    %c0_5 = arith.constant 0 : index
    %4 = vector.load %arg3[%c0_4, %c0_5] : memref<1x8xf32, #tpu.memory_space<vmem>>, vector<1x8xf32>
    %5 = vector.broadcast %4 : vector<1x8xf32> to vector<16x8xf32>
    %6 = arith.addf %3, %5 : vector<16x8xf32>
    %7 = vector.extract_strided_slice %6 {offsets = [0, 0], sizes = [16, 4], strides = [1, 1]} : vector<16x8xf32> to vector<16x4xf32>
    %8 = vector.shape_cast %7 : vector<16x4xf32> to vector<2x8x4xf32>
    %9 = vector.extract_strided_slice %6 {offsets = [0, 4], sizes = [16, 4], strides = [1, 1]} : vector<16x8xf32> to vector<16x4xf32>
    %10 = vector.shape_cast %9 : vector<16x4xf32> to vector<2x8x4xf32>
    %11 = tpu.iota {dimensions = array<i32: 0>} : vector<18x8xi32>
    %12 = tpu.iota {dimensions = array<i32: 1>} : vector<18x8xi32>
    %c2_i32 = arith.constant 2 : i32
    %13 = vector.broadcast %c2_i32 : i32 to vector<18x8xi32>
    %14 = arith.muli %13, %12 : vector<18x8xi32>
    %c1_i32 = arith.constant 1 : i32
    %15 = vector.broadcast %c1_i32 : i32 to vector<18x8xi32>
    %16 = arith.addi %15, %14 : vector<18x8xi32>
    %17 = arith.cmpi eq, %11, %16 : vector<18x8xi32>
    %18 = arith.extui %17 : vector<18x8xi1> to vector<18x8xi32>
    %19 = arith.sitofp %18 : vector<18x8xi32> to vector<18x8xf32>
    %c2_i32_6 = arith.constant 2 : i32
    %20 = vector.broadcast %c2_i32_6 : i32 to vector<18x8xi32>
    %21 = arith.muli %20, %12 : vector<18x8xi32>
    %c1_i32_7 = arith.constant 1 : i32
    %22 = vector.broadcast %c1_i32_7 : i32 to vector<18x8xi32>
    %23 = arith.addi %22, %21 : vector<18x8xi32>
    %c1_i32_8 = arith.constant 1 : i32
    %24 = vector.broadcast %c1_i32_8 : i32 to vector<18x8xi32>
    %25 = arith.addi %23, %24 : vector<18x8xi32>
    %26 = arith.cmpi eq, %11, %25 : vector<18x8xi32>
    %27 = arith.extui %26 : vector<18x8xi1> to vector<18x8xi32>
    %28 = arith.sitofp %27 : vector<18x8xi32> to vector<18x8xf32>
    %29 = vector.shape_cast %19 : vector<18x8xf32> to vector<1x18x8xf32>
    %30 = vector.shape_cast %29 : vector<1x18x8xf32> to vector<1x18x8xf32>
    %31 = vector.broadcast %30 : vector<1x18x8xf32> to vector<2x18x8xf32>
    %cst_9 = arith.constant dense<0.000000e+00> : vector<2x18x4xf32>
    %32 = tpu.matmul %31, %8, %cst_9 {dimension_numbers = #tpu.dot_dimension_numbers<[2], [1], [1], [2], [0, 0, 0, 1, 1, 2], [0], [0]>} : vector<2x18x8xf32>, vector<2x8x4xf32>, vector<2x18x4xf32> -> vector<2x18x4xf32>
    %33 = vector.shape_cast %28 : vector<18x8xf32> to vector<1x18x8xf32>
    %34 = vector.shape_cast %33 : vector<1x18x8xf32> to vector<1x18x8xf32>
    %35 = vector.broadcast %34 : vector<1x18x8xf32> to vector<2x18x8xf32>
    %cst_10 = arith.constant dense<0.000000e+00> : vector<2x18x4xf32>
    %36 = tpu.matmul %35, %10, %cst_10 {dimension_numbers = #tpu.dot_dimension_numbers<[2], [1], [1], [2], [0, 0, 0, 1, 1, 2], [0], [0]>} : vector<2x18x8xf32>, vector<2x8x4xf32>, vector<2x18x4xf32> -> vector<2x18x4xf32>
    %37 = arith.addf %32, %36 : vector<2x18x4xf32>
    %c0_11 = arith.constant 0 : index
    %c0_12 = arith.constant 0 : index
    %c0_13 = arith.constant 0 : index
    %38 = vector.load %arg1[%c0_11, %c0_12, %c0_13] : memref<2x18x4xf32, #tpu.memory_space<vmem>>, vector<2x18x4xf32>
    %39 = tpu.concatenate %38, %37 in 2 : vector<2x18x4xf32>, vector<2x18x4xf32> -> vector<2x18x8xf32>
    %c0_14 = arith.constant 0 : index
    %c0_15 = arith.constant 0 : index
    %40 = vector.load %arg4[%c0_14, %c0_15] : memref<24x4xf32, #tpu.memory_space<vmem>>, vector<24x4xf32>
    %cst_16 = arith.constant 0.000000e+00 : f32
    %41 = vector.broadcast %cst_16 : f32 to vector<2x1x8xf32>
    %42 = tpu.concatenate %41, %39, %41 in 1 : vector<2x1x8xf32>, vector<2x18x8xf32>, vector<2x1x8xf32> -> vector<2x20x8xf32>
    %43 = vector.extract_strided_slice %42 {offsets = [0, 0, 0], sizes = [2, 18, 8], strides = [1, 1, 1]} : vector<2x20x8xf32> to vector<2x18x8xf32>
    %44 = vector.extract_strided_slice %42 {offsets = [0, 1, 0], sizes = [2, 18, 8], strides = [1, 1, 1]} : vector<2x20x8xf32> to vector<2x18x8xf32>
    %45 = vector.extract_strided_slice %42 {offsets = [0, 2, 0], sizes = [2, 18, 8], strides = [1, 1, 1]} : vector<2x20x8xf32> to vector<2x18x8xf32>
    %46 = tpu.concatenate %43, %44, %45 in 2 : vector<2x18x8xf32>, vector<2x18x8xf32>, vector<2x18x8xf32> -> vector<2x18x24xf32>
    %47 = vector.shape_cast %46 : vector<2x18x24xf32> to vector<36x24xf32>
    %cst_17 = arith.constant dense<0.000000e+00> : vector<36x4xf32>
    %48 = tpu.matmul %47, %40, %cst_17 {dimension_numbers = #tpu.dot_dimension_numbers<[1], [0], [0], [1], [0, 0, 1, 1], [], []>} : vector<36x24xf32>, vector<24x4xf32>, vector<36x4xf32> -> vector<36x4xf32>
    %c0_18 = arith.constant 0 : index
    %c0_19 = arith.constant 0 : index
    %49 = vector.load %arg5[%c0_18, %c0_19] : memref<1x4xf32, #tpu.memory_space<vmem>>, vector<1x4xf32>
    %c0_20 = arith.constant 0 : index
    %c0_21 = arith.constant 0 : index
    %50 = vector.load %arg6[%c0_20, %c0_21] : memref<1x4xf32, #tpu.memory_space<vmem>>, vector<1x4xf32>
    %cst_22 = arith.constant dense<0.000000e+00> : vector<4xf32>
    %51 = vector.multi_reduction <add>, %48, %cst_22 [0] : vector<36x4xf32> to vector<4xf32>
    %52 = vector.shape_cast %51 : vector<4xf32> to vector<1x4xf32>
    %cst_23 = arith.constant 3.600000e+01 : f32
    %53 = vector.broadcast %cst_23 : f32 to vector<1x4xf32>
    %54 = arith.divf %52, %53 : vector<1x4xf32>
    %55 = arith.mulf %48, %48 : vector<36x4xf32>
    %cst_24 = arith.constant dense<0.000000e+00> : vector<4xf32>
    %56 = vector.multi_reduction <add>, %55, %cst_24 [0] : vector<36x4xf32> to vector<4xf32>
    %57 = vector.shape_cast %56 : vector<4xf32> to vector<1x4xf32>
    %cst_25 = arith.constant 3.600000e+01 : f32
    %58 = vector.broadcast %cst_25 : f32 to vector<1x4xf32>
    %59 = arith.divf %57, %58 : vector<1x4xf32>
    %60 = arith.mulf %54, %54 : vector<1x4xf32>
    %61 = arith.subf %59, %60 : vector<1x4xf32>
    %cst_26 = arith.constant 9.99999974E-6 : f32
    %62 = vector.broadcast %cst_26 : f32 to vector<1x4xf32>
    %63 = arith.addf %61, %62 : vector<1x4xf32>
    %64 = math.rsqrt %63 : vector<1x4xf32>
    %65 = arith.mulf %49, %64 : vector<1x4xf32>
    %66 = arith.mulf %54, %65 : vector<1x4xf32>
    %67 = arith.subf %50, %66 : vector<1x4xf32>
    %68 = vector.broadcast %65 : vector<1x4xf32> to vector<36x4xf32>
    %69 = arith.mulf %48, %68 : vector<36x4xf32>
    %70 = vector.broadcast %67 : vector<1x4xf32> to vector<36x4xf32>
    %71 = arith.addf %69, %70 : vector<36x4xf32>
    %cst_27 = arith.constant 0.000000e+00 : f32
    %72 = vector.broadcast %cst_27 : f32 to vector<36x4xf32>
    %73 = arith.maximumf %71, %72 : vector<36x4xf32>
    %74 = vector.shape_cast %73 : vector<36x4xf32> to vector<2x18x4xf32>
    %c0_28 = arith.constant 0 : index
    %c0_29 = arith.constant 0 : index
    %75 = vector.load %arg7[%c0_28, %c0_29] : memref<12x4xf32, #tpu.memory_space<vmem>>, vector<12x4xf32>
    %cst_30 = arith.constant 0.000000e+00 : f32
    %76 = vector.broadcast %cst_30 : f32 to vector<2x1x4xf32>
    %77 = tpu.concatenate %76, %74, %76 in 1 : vector<2x1x4xf32>, vector<2x18x4xf32>, vector<2x1x4xf32> -> vector<2x20x4xf32>
    %78 = vector.extract_strided_slice %77 {offsets = [0, 0, 0], sizes = [2, 18, 4], strides = [1, 1, 1]} : vector<2x20x4xf32> to vector<2x18x4xf32>
    %79 = vector.extract_strided_slice %77 {offsets = [0, 1, 0], sizes = [2, 18, 4], strides = [1, 1, 1]} : vector<2x20x4xf32> to vector<2x18x4xf32>
    %80 = vector.extract_strided_slice %77 {offsets = [0, 2, 0], sizes = [2, 18, 4], strides = [1, 1, 1]} : vector<2x20x4xf32> to vector<2x18x4xf32>
    %81 = tpu.concatenate %78, %79, %80 in 2 : vector<2x18x4xf32>, vector<2x18x4xf32>, vector<2x18x4xf32> -> vector<2x18x12xf32>
    %82 = vector.shape_cast %81 : vector<2x18x12xf32> to vector<36x12xf32>
    %cst_31 = arith.constant dense<0.000000e+00> : vector<36x4xf32>
    %83 = tpu.matmul %82, %75, %cst_31 {dimension_numbers = #tpu.dot_dimension_numbers<[1], [0], [0], [1], [0, 0, 1, 1], [], []>} : vector<36x12xf32>, vector<12x4xf32>, vector<36x4xf32> -> vector<36x4xf32>
    %c0_32 = arith.constant 0 : index
    %c0_33 = arith.constant 0 : index
    %84 = vector.load %arg8[%c0_32, %c0_33] : memref<1x4xf32, #tpu.memory_space<vmem>>, vector<1x4xf32>
    %c0_34 = arith.constant 0 : index
    %c0_35 = arith.constant 0 : index
    %85 = vector.load %arg9[%c0_34, %c0_35] : memref<1x4xf32, #tpu.memory_space<vmem>>, vector<1x4xf32>
    %cst_36 = arith.constant dense<0.000000e+00> : vector<4xf32>
    %86 = vector.multi_reduction <add>, %83, %cst_36 [0] : vector<36x4xf32> to vector<4xf32>
    %87 = vector.shape_cast %86 : vector<4xf32> to vector<1x4xf32>
    %cst_37 = arith.constant 3.600000e+01 : f32
    %88 = vector.broadcast %cst_37 : f32 to vector<1x4xf32>
    %89 = arith.divf %87, %88 : vector<1x4xf32>
    %90 = arith.mulf %83, %83 : vector<36x4xf32>
    %cst_38 = arith.constant dense<0.000000e+00> : vector<4xf32>
    %91 = vector.multi_reduction <add>, %90, %cst_38 [0] : vector<36x4xf32> to vector<4xf32>
    %92 = vector.shape_cast %91 : vector<4xf32> to vector<1x4xf32>
    %cst_39 = arith.constant 3.600000e+01 : f32
    %93 = vector.broadcast %cst_39 : f32 to vector<1x4xf32>
    %94 = arith.divf %92, %93 : vector<1x4xf32>
    %95 = arith.mulf %89, %89 : vector<1x4xf32>
    %96 = arith.subf %94, %95 : vector<1x4xf32>
    %cst_40 = arith.constant 9.99999974E-6 : f32
    %97 = vector.broadcast %cst_40 : f32 to vector<1x4xf32>
    %98 = arith.addf %96, %97 : vector<1x4xf32>
    %99 = math.rsqrt %98 : vector<1x4xf32>
    %100 = arith.mulf %84, %99 : vector<1x4xf32>
    %101 = arith.mulf %89, %100 : vector<1x4xf32>
    %102 = arith.subf %85, %101 : vector<1x4xf32>
    %103 = vector.broadcast %100 : vector<1x4xf32> to vector<36x4xf32>
    %104 = arith.mulf %83, %103 : vector<36x4xf32>
    %105 = vector.broadcast %102 : vector<1x4xf32> to vector<36x4xf32>
    %106 = arith.addf %104, %105 : vector<36x4xf32>
    %cst_41 = arith.constant 0.000000e+00 : f32
    %107 = vector.broadcast %cst_41 : f32 to vector<36x4xf32>
    %108 = arith.maximumf %106, %107 : vector<36x4xf32>
    %109 = vector.shape_cast %108 : vector<36x4xf32> to vector<2x18x4xf32>
    %c0_42 = arith.constant 0 : index
    %c0_43 = arith.constant 0 : index
    %c0_44 = arith.constant 0 : index
    %110 = vector.load %arg10[%c0_42, %c0_43, %c0_44] : memref<2x18x4xf32, #tpu.memory_space<vmem>>, vector<2x18x4xf32>
    tpu.vector_store %arg10[%c0_42, %c0_43, %c0_44], %109 {strides = array<i32>} : memref<2x18x4xf32, #tpu.memory_space<vmem>>, vector<2x18x4xf32>,
    return
  }
}

</mosaic_0001>

<bundles_post_ra>
// kernel: tpu_custom_call.1
= control target key start
LH: loop header
LB: loop body
LE: loop exit
PB: predicated region body
PF: predicated region fallthrough
CT: control target
= control target key end

     0   :  { %vm45_vm0 = vcmask 64512   ;;  %v1928_v3 = vmov 0.0   ;;  %vm1929_vm1 = vmmov 0   ;;  %s1930_s19 = smov 124   ;;  %v127_v9 = vlaneseq  ;;  %s1932_s16 = smov 8   ;;  %s2415_s2 = inlined_call_operand.vmem [shape: f32[8,8], index: 2, kind: input, shape index: {}]   ;;  %s2416_s0 = inlined_call_operand.vmem [shape: f32[2,8,8], index: 0, kind: input, shape index: {}]   ;;  %s2417_s3 = inlined_call_operand.vmem [shape: f32[1,8], index: 3, kind: input, shape index: {}]   ;;  %s2418_s1 = inlined_call_operand.vmem [shape: f32[2,18,4], index: 1, kind: input, shape index: {}]   ;;  %s2419_s4 = inlined_call_operand.vmem [shape: f32[24,4], index: 4, kind: input, shape index: {}]   ;;  %s2420_s5 = inlined_call_operand.vmem [shape: f32[1,4], index: 5, kind: input, shape index: {}]   ;;  %s2421_s6 = inlined_call_operand.vmem [shape: f32[1,4], index: 6, kind: input, shape index: {}]   ;;  %s2422_s7 = inlined_call_operand.vmem [shape: f32[12,4], index: 7, kind: input, shape index: {}]   ;;  %s2423_s8 = inlined_call_operand.vmem [shape: f32[1,4], index: 8, kind: input, shape index: {}]   ;;  %s2424_s9 = inlined_call_operand.vmem [shape: f32[1,4], index: 9, kind: input, shape index: {}]   ;;  %s2425_s10 = inlined_call_operand.vmem [shape: f32[2,18,4], index: 10, kind: output, shape index: {}]  }
   0x1   :  { %v37_v0 = vld [vmem:[%s2415_s2] sm:$0xff]  ;;  %v36_v2 = vld [vmem:[%s2416_s0 + $0x8] sm:$0xff]  ;;  %1833 = vmatprep.subr.mxu1 %v1928_v3  ;;  %1835 = vmatprep.mubr.msk.f32.mxu1 %vm1929_vm1, %v1928_v3  ;;  %vm530_vm8 = vcmask 31744   ;;  %vm546_vm9 = vcmask 1040384   ;;  %vm572_vm10 = vcmask 1046528   ;;  %vm601_vm11 = vcmask 1045504  }
   0x2   :  { %v35_v1 = vld [vmem:[%s2416_s0] sm:$0xff]  ;;  %1828 = vmatprep.subr.mxu0 %v37_v0  ;;  %v132_v10 = vand.u32 127, %v127_v9  ;;  %v2010_v13 = vshrl.u32 %v127_v9, 7  ;;  %v501_v59 = vld [vmem:[%s2418_s1 + $0x8] sm:$0xff]  ;;  %vm565_vm12 = vcmask 1042432   ;;  %s1933_s17 = smov 16  }
   0x3   :  { %1830 = vmatprep.mubr.msk.f32.mxu0 %vm45_vm0, %v35_v1  ;;  %1829 = vmatpush3.msra.mxu0 %v37_v0  ;;  %v1762_v5 = vld [vmem:[%s2417_s3] ss:$0 sm:$0xff]  ;;  %s1931_s3 = smov 4   ;;  %v503_v0 = vld [vmem:[%s2418_s1 + $0x18] sm:$0xff]  ;;  %v502_v1 = vld [vmem:[%s2418_s1 + $0x10] sm:$0x3] }
   0x4   :  { %1831 = vmatmul.mubr.msk.f32.vlgmr.msra.gmra.mxu0 %vm45_vm0, %v36_v2  ;;  %1844 = vmatprep.subr.mxu0 %v1928_v3  ;;  %v133_v11 = vmul.u32 2, %v132_v10  ;;  %v129_v15 = vadd.s32 8, %v2010_v13  ;;  %v130_v18 = vadd.s32 16, %v2010_v13  ;;  %v500_v55 = vld [vmem:[%s2418_s1] sm:$0xff]  ;;  %vm636_vm13 = vcmask 130048  }
   0x5   :  { %1846 = vmatprep.mubr.msk.f32.mxu0 %vm1929_vm1, %v1928_v3  ;;  %vm807_vm14 = vcmask 195584   ;;  %vm917_vm15 = vcmask 27648  }
   0x6   :  { %v134_v12 = vadd.s32 1, %v133_v11 }
   0x8   :  { %v144_v14 = vadd.s32 1, %v134_v12  ;;  %vm135_vm5 = vcmp.eq.s32.totalorder %v2010_v13, %v134_v12  ;;  %vm136_vm6 = vcmp.eq.s32.totalorder %v129_v15, %v134_v12  ;;  %vm137_vm7 = vcmp.eq.s32.totalorder %v130_v18, %v134_v12  ;;  %v539_v12 = vld [vmem:[%s2419_s4 + $0x10] sm:$0xff] }
   0x9   :  { %v1765_v22 = vsel %vm135_vm5, 1.0, %v1928_v3  ;;  %v1766_v23 = vsel %vm136_vm6, 1.0, %v1928_v3  ;;  %v1767_v24 = vsel %vm137_vm7, 1.0, %v1928_v3 }
   0xa   :  { %vm145_vm2 = vcmp.eq.s32.totalorder %v2010_v13, %v144_v14  ;;  %vm146_vm3 = vcmp.eq.s32.totalorder %v129_v15, %v144_v14  ;;  %vm147_vm4 = vcmp.eq.s32.totalorder %v130_v18, %v144_v14 }
   0xb   :  { %v1768_v16 = vsel %vm145_vm2, 1.0, %v1928_v3  ;;  %v1769_v19 = vsel %vm146_vm3, 1.0, %v1928_v3  ;;  %v1770_v21 = vsel %vm147_vm4, 1.0, %v1928_v3  ;;  %vm1415_vm2 = vcmask 1043456  }
   0xc   :  { %vm1404_vm3 = vcmask 97280  }
  0xc4   :  { %v1832_v4 = vpop.f32.mrf.mxu0 }
  0xc5   :  { %v124_v8 = vadd.f32 %v1832_v4, %v1762_v5 }
  0xc6   :  { %v118_v6 = vpop.f32.mrf.mxu0 }
  0xc7   :  { %v119_v7 = vadd.f32 %v1762_v5, %v118_v6 }
  0xc9   :  { %155 = vrot.lane.b32.xlu0 %v119_v7, %s1930_s19 }
  0xcd   :  { %248 = vrot.lane.b32.xlu0 %v124_v8, %s1930_s19 }
 0x13b   :  { %v156_v17 = vpop.permute.xlu0 %155 }
 0x13c   :  { %1834 = vmatpush3.msra.mxu1 %v156_v17  ;;  %v504_v17 = vld [vmem:[%s2418_s1 + $0x20] sm:$0xff] }
 0x13d   :  { %1836 = vmatmul.mubr.msk.f32.vlgmr.msra.gmra.mxu1 %vm45_vm0, %v1768_v16  ;;  %1855 = vmatprep.subr.mxu1 %v1928_v3 }
 0x13e   :  { %1856 = vmatpush3.msra.mxu1 %v119_v7  ;;  %1838 = vmatprep.mubr.msk.f32.mxu1 %vm1929_vm1, %v1928_v3 }
 0x13f   :  { %v249_v20 = vpop.permute.xlu0 %248  ;;  %1877 = vmatprep.subr.mxu1 %v1928_v3 }
 0x140   :  { %1845 = vmatpush3.msra.mxu0 %v249_v20  ;;  %v538_v20 = vld [vmem:[%s2419_s4 + $0x8] sm:$0xff] }
 0x141   :  { %1839 = vmatmul.mubr.msk.f32.gmra.mxu1 %vm45_vm0, %v1769_v19  ;;  %1847 = vmatmul.mubr.msk.f32.vlgmr.msra.gmra.mxu0 %vm45_vm0, %v1768_v16  ;;  %v505_v16 = vld [vmem:[%s2418_s1 + $0x28] sm:$0x3] }
 0x142   :  { %1866 = vmatprep.subr.mxu0 %v1928_v3  ;;  %1841 = vmatprep.mubr.msk.f32.mxu1 %vm1929_vm1, %v1928_v3 }
 0x143   :  { %1867 = vmatpush3.msra.mxu0 %v124_v8  ;;  %1849 = vmatprep.mubr.msk.f32.mxu0 %vm1929_vm1, %v1928_v3 }
 0x144   :  { %1898 = vmatprep.subr.mxu0 %v1928_v3 }
 0x145   :  { %1842 = vmatmul.mubr.msk.f32.gmra.mxu1 %vm45_vm0, %v1770_v21  ;;  %1850 = vmatmul.mubr.msk.f32.gmra.mxu0 %vm45_vm0, %v1769_v19 }
 0x146   :  { %1852 = vmatprep.mubr.msk.f32.mxu0 %vm1929_vm1, %v1928_v3  ;;  %1857 = vmatprep.mubr.msk.f32.mxu1 %vm1929_vm1, %v1928_v3 }
 0x149   :  { %1853 = vmatmul.mubr.msk.f32.gmra.mxu0 %vm45_vm0, %v1770_v21  ;;  %1858 = vmatmul.mubr.msk.f32.vlgmr.msra.gmra.mxu1 %vm45_vm0, %v1765_v22 }
 0x14a   :  { %1860 = vmatprep.mubr.msk.f32.mxu1 %vm1929_vm1, %v1928_v3  ;;  %1868 = vmatprep.mubr.msk.f32.mxu0 %vm1929_vm1, %v1928_v3 }
 0x14b   :  { %1878 = vmatpush3.msra.mxu1 %v539_v12 }
 0x14c   :  { %1879 = vmatprep.subr.mxu1 %v1928_v3 }
 0x14d   :  { %1861 = vmatmul.mubr.msk.f32.gmra.mxu1 %vm45_vm0, %v1766_v23  ;;  %1869 = vmatmul.mubr.msk.f32.vlgmr.msra.gmra.mxu0 %vm45_vm0, %v1765_v22 }
 0x14e   :  { %1863 = vmatprep.mubr.msk.f32.mxu1 %vm1929_vm1, %v1928_v3  ;;  %1871 = vmatprep.mubr.msk.f32.mxu0 %vm1929_vm1, %v1928_v3 }
 0x14f   :  { %1880 = vmatpush3.msra.mxu1 %v538_v20 }
 0x150   :  { %1881 = vmatprep.subr.mxu1 %v1928_v3 }
 0x151   :  { %1864 = vmatmul.mubr.msk.f32.gmra.mxu1 %vm45_vm0, %v1767_v24  ;;  %1872 = vmatmul.mubr.msk.f32.gmra.mxu0 %vm45_vm0, %v1766_v23 }
 0x152   :  { %1874 = vmatprep.mubr.msk.f32.mxu0 %vm1929_vm1, %v1928_v3  ;;  %1883 = vmatprep.mubr.msk.f32.mxu1 %vm1929_vm1, %v1928_v3 }
 0x155   :  { %1875 = vmatmul.mubr.msk.f32.gmra.mxu0 %vm45_vm0, %v1767_v24 }
 0x156   :  { %1902 = vmatprep.mubr.msk.f32.mxu0 %vm1929_vm1, %v1928_v3 }
 0x1fd   :  { %v233_v25 = vpop.f32.mrf.mxu1 }
 0x1ff   :  { %v1837_v26 = vpop.f32.mrf.mxu1 }
 0x201   :  { %v238_v27 = vpop.f32.mrf.mxu1  ;;  %v317_v28 = vpop.f32.mrf.mxu0 }
 0x203   :  { %v1840_v29 = vpop.f32.mrf.mxu1  ;;  %v1848_v30 = vpop.f32.mrf.mxu0 }
 0x205   :  { %v243_v31 = vpop.f32.mrf.mxu1  ;;  %v322_v32 = vpop.f32.mrf.mxu0 }
 0x207   :  { %v1843_v33 = vpop.f32.mrf.mxu1  ;;  %v1851_v34 = vpop.f32.mrf.mxu0 }
 0x209   :  { %v327_v35 = vpop.f32.mrf.mxu0  ;;  %v406_v36 = vpop.f32.mrf.mxu1 }
 0x20a   :  { %v407_v37 = vadd.f32 %v406_v36, %v233_v25 }
 0x20b   :  { %v1854_v38 = vpop.f32.mrf.mxu0  ;;  %v1859_v39 = vpop.f32.mrf.mxu1 }
 0x20c   :  { %512 = vrot.lane.b32.xlu1 %v407_v37, %s1931_s3 }
 0x20d   :  { %v411_v40 = vpop.f32.mrf.mxu1  ;;  %v486_v41 = vpop.f32.mrf.mxu0 }
 0x20e   :  { %v412_v42 = vadd.f32 %v411_v40, %v238_v27  ;;  %v487_v47 = vadd.f32 %v486_v41, %v317_v28  ;;  %v537_v28 = vld [vmem:[%s2419_s4] sm:$0xff] }
 0x20f   :  { %v1862_v43 = vpop.f32.mrf.mxu1  ;;  %v1870_v44 = vpop.f32.mrf.mxu0  ;;  %1882 = vmatpush3.msra.mxu1 %v537_v28 }
 0x210   :  { %514 = vrot.lane.b32.xlu1 %v412_v42, %s1931_s3 }
 0x211   :  { %v416_v45 = vpop.f32.mrf.mxu1  ;;  %v491_v46 = vpop.f32.mrf.mxu0 }
 0x212   :  { %v417_v48 = vadd.f32 %v416_v45, %v243_v31  ;;  %v492_v52 = vadd.f32 %v491_v46, %v322_v32 }
 0x213   :  { %v1865_v49 = vpop.f32.mrf.mxu1  ;;  %v1873_v50 = vpop.f32.mrf.mxu0 }
 0x214   :  { %516 = vrot.lane.b32.xlu0 %v417_v48, %s1931_s3  ;;  %518 = vrot.lane.b32.xlu1 %v487_v47, %s1931_s3  ;;  %v1934_v48 = vmov 1983009808  }
 0x215   :  { %v496_v51 = vpop.f32.mrf.mxu0  ;;  %v651_v49 = vunpack.c.l.s4 %v1934_v48 }
 0x216   :  { %v497_v53 = vadd.f32 %v496_v51, %v327_v35 }
 0x217   :  { %v1876_v54 = vpop.f32.mrf.mxu0  ;;  %v652_v50 = vunpack.c.0.s8 %v651_v49 }
 0x218   :  { %520 = vrot.lane.b32.xlu0 %v492_v52, %s1931_s3  ;;  %522 = vrot.lane.b32.xlu1 %v497_v53, %s1931_s3 }
 0x219   :  { %v2156_v51 = vsub.s32 %v652_v50, %v2010_v13 }
 0x27e   :  { %v513_v56 = vpop.permute.xlu1 %512 }
 0x27f   :  { %v531_v57 = vsel %vm530_vm8, %v500_v55, %v513_v56 }
 0x280   :  { %v547_v58 = vrot.slane %v531_v57, 7 }
 0x282   :  { %v515_v60 = vpop.permute.xlu1 %514  ;;  %v2076_v61 = vsel %vm546_vm9, 0.0, %v547_v58 }
 0x283   :  { %v532_v62 = vsel %vm530_vm8, %v501_v59, %v515_v60  ;;  %v573_v6 = vrot.slane %v2076_v61, 1  ;;  %v602_v7 = vrot.slane %v2076_v61, 2 }
 0x284   :  { %v548_v63 = vrot.slane %v532_v62, 7 }
 0x286   :  { %v2086_v2 = vsel %vm546_vm9, %v547_v58, %v548_v63  ;;  %v519_v4 = vpop.permute.xlu1 %518  ;;  %v517_v5 = vpop.permute.xlu0 %516 }
 0x287   :  { %v534_v8 = vsel %vm530_vm8, %v503_v0, %v519_v4  ;;  %v533_v9 = vsel %vm530_vm8, %v502_v1, %v517_v5  ;;  %v574_v10 = vrot.slane %v2086_v2, 1  ;;  %v603_v11 = vrot.slane %v2086_v2, 2 }
 0x288   :  { %v552_v14 = vrot.slane %v534_v8, 7  ;;  %v550_v15 = vrot.slane %v533_v9, 7 }
 0x289   :  { %v575_v18 = vsel %vm572_vm10, %v573_v6, %v574_v10  ;;  %v604_v19 = vsel %vm601_vm11, %v602_v7, %v603_v11 }
 0x28a   :  { %v551_v21 = vsel %vm546_vm9, %v548_v63, %v550_v15  ;;  %583 = vrot.lane.b32.xlu0 %v575_v18, %s1932_s16  ;;  %612 = vrot.lane.b32.xlu1 %v604_v19, %s1933_s17  ;;  %v523_v22 = vpop.permute.xlu1 %522  ;;  %v521_v23 = vpop.permute.xlu0 %520  ;;  %v2113_v24 = vsel %vm546_vm9, 0.0, %v552_v14 }
 0x28b   :  { %v2116_v25 = vsel %vm565_vm12, %v551_v21, 0.0  ;;  %v536_v26 = vsel %vm530_vm8, %v505_v16, %v523_v22  ;;  %v535_v27 = vsel %vm530_vm8, %v504_v17, %v521_v23  ;;  %v607_v36 = vrot.slane %v2113_v24, 2 }
 0x28c   :  { %v555_v29 = vrot.slane %v536_v26, 7  ;;  %v553_v30 = vrot.slane %v535_v27, 7  ;;  %v605_v31 = vrot.slane %v2116_v25, 2  ;;  %v576_v32 = vrot.slane %v2116_v25, 1 }
 0x28d   :  { %v578_v38 = vrot.slane %v2113_v24, 1 }
 0x28e   :  { %v2127_v33 = vsel %vm546_vm9, %v552_v14, %v553_v30  ;;  %v606_v34 = vsel %vm601_vm11, %v603_v11, %v605_v31  ;;  %v577_v35 = vsel %vm572_vm10, %v574_v10, %v576_v32  ;;  %v556_v40 = vsel %vm546_vm9, %v553_v30, %v555_v29 }
 0x28f   :  { %614 = vrot.lane.b32.xlu1 %v606_v34, %s1933_s17  ;;  %585 = vrot.lane.b32.xlu0 %v577_v35, %s1932_s16  ;;  %v608_v37 = vrot.slane %v2127_v33, 2  ;;  %v579_v39 = vrot.slane %v2127_v33, 1  ;;  %v2141_v43 = vsel %vm565_vm12, %v556_v40, 0.0 }
 0x290   :  { %v610_v44 = vrot.slane %v2141_v43, 2  ;;  %v581_v45 = vrot.slane %v2141_v43, 1 }
 0x291   :  { %v609_v41 = vsel %vm601_vm11, %v607_v36, %v608_v37  ;;  %v580_v42 = vsel %vm572_vm10, %v578_v38, %v579_v39 }
 0x292   :  { %v611_v46 = vsel %vm601_vm11, %v608_v37, %v610_v44  ;;  %v582_v47 = vsel %vm572_vm10, %v579_v39, %v581_v45 }
 0x293   :  { %618 = vrot.lane.b32.xlu1 %v609_v41, %s1933_s17  ;;  %589 = vrot.lane.b32.xlu0 %v580_v42, %s1932_s16 }
 0x297   :  { %616 = vrot.lane.b32.xlu1 %v605_v31, %s1933_s17  ;;  %587 = vrot.lane.b32.xlu0 %v576_v32, %s1932_s16 }
 0x29b   :  { %620 = vrot.lane.b32.xlu1 %v611_v46, %s1933_s17  ;;  %591 = vrot.lane.b32.xlu0 %v582_v47, %s1932_s16 }
 0x29f   :  { %622 = vrot.lane.b32.xlu1 %v610_v44, %s1933_s17  ;;  %593 = vrot.lane.b32.xlu0 %v581_v45, %s1932_s16 }
 0x2fc   :  { %v613_v52 = vpop.permute.xlu1 %612  ;;  %v584_v53 = vpop.permute.xlu0 %583 }
 0x2fd   :  { %v630_v54 = vsel %vm45_vm0, %v2076_v61, %v584_v53 }
 0x2fe   :  { %v637_v55 = vsel %vm636_vm13, %v630_v54, %v613_v52 }
 0x2ff   :  { %v649_v56 = vcombine.high %v637_v55, %v637_v55  ;;  %v656_v57 = vrot.slane %v637_v55, %v2156_v51 }
 0x301   :  { %v663_v58 = vrot.slane %v649_v56, %v2156_v51  ;;  %v664_v59 = vcombine.high %v656_v57, %v656_v57  ;;  %v615_v60 = vpop.permute.xlu1 %614  ;;  %v586_v62 = vpop.permute.xlu0 %585 }
 0x302   :  { %v631_v63 = vsel %vm45_vm0, %v2086_v2, %v586_v62 }
 0x303   :  { %v665_v0 = vcombine.high %v663_v58, %v663_v58  ;;  %v731_v1 = vcombine.low %v656_v57, %v664_v59  ;;  %v638_v4 = vsel %vm636_vm13, %v631_v63, %v615_v60 }
 0x304   :  { %v666_v5 = vcombine.high %v638_v4, %v638_v4  ;;  %v673_v61 = vrot.slane %v638_v4, %v2156_v51 }
 0x305   :  { %v732_v6 = vcombine.low %v663_v58, %v665_v0  ;;  %v619_v7 = vpop.permute.xlu1 %618  ;;  %v590_v8 = vpop.permute.xlu0 %589  ;;  %v739_v12 = vrot.slane %v731_v1, %v2156_v51 }
 0x306   :  { %v680_v9 = vrot.slane %v666_v5, %v2156_v51  ;;  %v681_v10 = vcombine.high %v673_v61, %v673_v61  ;;  %v633_v11 = vsel %vm45_vm0, %v2113_v24, %v590_v8 }
 0x307   :  { %v746_v2 = vrot.slane %v732_v6, %v2156_v51  ;;  %v640_v14 = vsel %vm636_vm13, %v633_v11, %v619_v7 }
 0x308   :  { %v682_v15 = vcombine.high %v680_v9, %v680_v9  ;;  %v748_v16 = vcombine.low %v673_v61, %v681_v10  ;;  %v690_v17 = vcombine.high %v640_v14, %v640_v14  ;;  %v697_v18 = vrot.slane %v640_v14, %v2156_v51 }
 0x309   :  { %v747_v19 = vcombine.low %v739_v12, %v746_v2  ;;  %v617_v20 = vpop.permute.xlu1 %616  ;;  %v588_v21 = vpop.permute.xlu0 %587 }
 0x30a   :  { %v749_v22 = vcombine.low %v680_v9, %v682_v15  ;;  %v704_v23 = vrot.slane %v690_v17, %v2156_v51  ;;  %v705_v26 = vcombine.high %v697_v18, %v697_v18  ;;  %v632_v24 = vsel %vm45_vm0, %v2116_v25, %v588_v21 }
 0x30b   :  { %1884 = vmatmul.mubr.msk.f32.vlgmr.msra.gmra.mxu1 %vm807_vm14, %v747_v19  ;;  %v756_v27 = vrot.slane %v748_v16, %v2156_v51  ;;  %v639_v28 = vsel %vm636_vm13, %v632_v24, %v617_v20 }
 0x30c   :  { %1886 = vmatprep.mubr.msk.f32.mxu1 %vm1929_vm1, %v1928_v3  ;;  %v763_v29 = vrot.slane %v749_v22, %v2156_v51  ;;  %v766_v30 = vcombine.low %v705_v26, %v704_v23  ;;  %v689_v31 = vrot.slane %v639_v28, %v2156_v51  ;;  %v706_v38 = vcombine.high %v704_v23, %v704_v23 }
 0x30d   :  { %v621_v32 = vpop.permute.xlu1 %620  ;;  %v592_v34 = vpop.permute.xlu0 %591 }
 0x30e   :  { %v634_v35 = vsel %vm45_vm0, %v2127_v33, %v592_v34  ;;  %v764_v25 = vcombine.low %v756_v27, %v763_v29  ;;  %v765_v36 = vcombine.low %v689_v31, %v697_v18  ;;  %v780_v45 = vrot.slane %v766_v30, %v2156_v51 }
 0x30f   :  { %v641_v37 = vsel %vm636_vm13, %v634_v35, %v621_v32 }
 0x310   :  { %v707_v39 = vcombine.high %v641_v37, %v641_v37  ;;  %v714_v40 = vrot.slane %v641_v37, %v2156_v51  ;;  %1887 = vmatmul.mubr.msk.f32.gmra.mxu1 %vm807_vm14, %v764_v25  ;;  %v773_v41 = vrot.slane %v765_v36, %v2156_v51 }
 0x311   :  { %v623_v42 = vpop.permute.xlu1 %622  ;;  %v594_v44 = vpop.permute.xlu0 %593  ;;  %1889 = vmatprep.mubr.msk.f32.mxu1 %vm1929_vm1, %v1928_v3 }
 0x312   :  { %v721_v33 = vrot.slane %v707_v39, %v2156_v51  ;;  %v722_v46 = vcombine.high %v714_v40, %v714_v40  ;;  %v782_v47 = vcombine.low %v706_v38, %v714_v40  ;;  %v635_v48 = vsel %vm45_vm0, %v2141_v43, %v594_v44 }
 0x313   :  { %v642_v49 = vsel %vm636_vm13, %v635_v48, %v623_v42  ;;  %v781_v50 = vcombine.low %v773_v41, %v780_v45  ;;  %v908_v48 = vld [vmem:[%s2420_s5] sm:$0x1] }
 0x314   :  { %v783_v52 = vcombine.low %v722_v46, %v721_v33  ;;  %v723_v53 = vcombine.high %v721_v33, %v721_v33  ;;  %v730_v54 = vrot.slane %v642_v49, %v2156_v51  ;;  %v790_v55 = vrot.slane %v782_v47, %v2156_v51 }
 0x315   :  { %1890 = vmatmul.mubr.msk.f32.gmra.mxu1 %vm807_vm14, %v781_v50  ;;  %v2232_v49 = vsub.s32 0, %v2010_v13 }
 0x316   :  { %1892 = vmatprep.mubr.msk.f32.mxu1 %vm1929_vm1, %v1928_v3  ;;  %v797_v56 = vrot.slane %v783_v52, %v2156_v51  ;;  %v799_v57 = vcombine.low %v723_v53, %v730_v54  ;;  %v909_v53 = vld [vmem:[%s2421_s6] sm:$0x1] }
 0x318   :  { %v798_v58 = vcombine.low %v790_v55, %v797_v56  ;;  %v806_v43 = vrot.slane %v799_v57, %v2156_v51 }
 0x31a   :  { %1893 = vmatmul.mubr.msk.f32.gmra.mxu1 %vm807_vm14, %v798_v58 }
 0x31b   :  { %1895 = vmatprep.mubr.msk.f32.mxu1 %vm1929_vm1, %v1928_v3 }
 0x31e   :  { %1896 = vmatmul.mubr.msk.f32.gmra.mxu1 %vm807_vm14, %v806_v43 }
 0x3cb   :  { %v2208_v59 = vpop.f32.mrf.mxu1 }
 0x3cc   :  { %v928_v4 = vmul.f32 %v2208_v59, %v2208_v59  ;;  %v910_v7 = vsel %vm530_vm8, %v2208_v59, 0.0 }
 0x3cd   :  { %v1885_v60 = vpop.f32.mrf.mxu1 }
 0x3ce   :  { %v933_v12 = vsel %vm530_vm8, %v928_v4, 0.0 }
 0x3d0   :  { %v2210_v62 = vpop.f32.mrf.mxu1 }
 0x3d1   :  { %v929_v0 = vmul.f32 %v2210_v62, %v2210_v62  ;;  %v911_v5 = vsel %vm530_vm8, %v2210_v62, 0.0 }
 0x3d2   :  { %v1888_v63 = vpop.f32.mrf.mxu1  ;;  %v912_v10 = vadd.f32 %v911_v5, %v910_v7 }
 0x3d3   :  { %v934_v8 = vsel %vm530_vm8, %v929_v0, 0.0 }
 0x3d4   :  { %v935_v16 = vadd.f32 %v934_v8, %v933_v12 }
 0x3d5   :  { %v894_v1 = vpop.f32.mrf.mxu1 }
 0x3d6   :  { %v930_v61 = vmul.f32 %v894_v1, %v894_v1  ;;  %v913_v9 = vsel %vm530_vm8, %v894_v1, 0.0 }
 0x3d7   :  { %v1891_v6 = vpop.f32.mrf.mxu1  ;;  %v914_v17 = vadd.f32 %v913_v9, %v912_v10 }
 0x3d8   :  { %v936_v2 = vsel %vm530_vm8, %v930_v61, 0.0 }
 0x3d9   :  { %v937_v20 = vadd.f32 %v936_v2, %v935_v16 }
 0x3da   :  { %v899_v11 = vpop.f32.mrf.mxu1 }
 0x3db   :  { %v915_v14 = vsel %vm530_vm8, %v899_v11, 0.0  ;;  %v931_v15 = vmul.f32 %v899_v11, %v899_v11 }
 0x3dc   :  { %v1894_v18 = vpop.f32.mrf.mxu1  ;;  %v916_v21 = vadd.f32 %v915_v14, %v914_v17 }
 0x3dd   :  { %v938_v19 = vsel %vm530_vm8, %v931_v15, 0.0 }
 0x3de   :  { %v904_v22 = vpop.f32.mrf.mxu1  ;;  %v939_v24 = vadd.f32 %v938_v19, %v937_v20 }
 0x3df   :  { %v918_v23 = vsel %vm917_vm15, %v904_v22, 0.0  ;;  %v932_v26 = vmul.f32 %v904_v22, %v904_v22 }
 0x3e0   :  { %v919_v27 = vadd.f32 %v918_v23, %v916_v21  ;;  %v1897_v28 = vpop.f32.mrf.mxu1 }
 0x3e1   :  { %v940_v29 = vsel %vm917_vm15, %v932_v26, 0.0 }
 0x3e2   :  { %v920_v30 = vrot.slane %v919_v27, 4  ;;  %v941_v31 = vadd.f32 %v940_v29, %v939_v24 }
 0x3e4   :  { %v921_v32 = vadd.f32 %v920_v30, %v919_v27  ;;  %v942_v34 = vrot.slane %v941_v31, 4 }
 0x3e6   :  { %v922_v35 = vrot.slane %v921_v32, 2  ;;  %v943_v25 = vadd.f32 %v942_v34, %v941_v31 }
 0x3e8   :  { %v923_v36 = vadd.f32 %v922_v35, %v921_v32  ;;  %v944_v37 = vrot.slane %v943_v25, 2 }
 0x3ea   :  { %v924_v38 = vrot.slane %v923_v36, 1  ;;  %v945_v39 = vadd.f32 %v944_v37, %v943_v25 }
 0x3ec   :  { %v925_v40 = vadd.f32 %v924_v38, %v923_v36  ;;  %v946_v41 = vrot.slane %v945_v39, 1 }
 0x3ee   :  { %v927_v42 = vmul.f32 0.027777778, %v925_v40  ;;  %v947_v44 = vadd.f32 %v946_v41, %v945_v39 }
 0x3f0   :  { %v948_v45 = vmul.f32 0.027777778, %v947_v44  ;;  %v949_v33 = vmul.f32 %v927_v42, %v927_v42 }
 0x3f2   :  { %v950_v46 = vsub.f32 %v948_v45, %v949_v33 }
 0x3f4   :  { %v951_v47 = vadd.f32 1e-05, %v950_v46 }
 0x3f6   :  { %1924 = vrsqrt.f32 %v951_v47 }
 0x403   :  { %v1925_v50 = vpop.eup %1924 }
 0x404   :  { %v953_v52 = vmul.f32 %v1925_v50, %v908_v48 }
 0x406   :  { %v954_v54 = vmul.f32 %v953_v52, %v927_v42  ;;  %v960_v55 = vrot.slane %v953_v52, %v2232_v49 }
 0x408   :  { %v955_v56 = vsub.f32 %v909_v53, %v954_v54  ;;  %v965_v57 = vmul.f32 %v960_v55, %v899_v11  ;;  %v966_v58 = vmul.f32 %v960_v55, %v904_v22  ;;  %v962_v60 = vmul.f32 %v960_v55, %v2208_v59 }
 0x409   :  { %v963_v63 = vmul.f32 %v960_v55, %v2210_v62  ;;  %v964_v13 = vmul.f32 %v960_v55, %v894_v1 }
 0x40a   :  { %v971_v43 = vrot.slane %v955_v56, %v2232_v49 }
 0x40c   :  { %v976_v0 = vadd.f32 %v971_v43, %v965_v57  ;;  %v977_v4 = vadd.f32 %v971_v43, %v966_v58  ;;  %v973_v5 = vadd.f32 %v971_v43, %v962_v60  ;;  %v974_v61 = vadd.f32 %v971_v43, %v963_v63 }
 0x40d   :  { %v975_v6 = vadd.f32 %v971_v43, %v964_v13 }
 0x40e   :  { %v981_v7 = vmax.f32 %v976_v0, 0.0  ;;  %v978_v8 = vmax.f32 %v973_v5, 0.0  ;;  %v979_v9 = vmax.f32 %v974_v61, 0.0  ;;  %v982_v12 = vmax.f32 %v977_v4, 0.0 }
 0x40f   :  { %v980_v10 = vmax.f32 %v975_v6, 0.0 }
 0x410   :  { %v1039_v2 = vcombine.high %v981_v7, %v981_v7  ;;  %v1046_v11 = vrot.slane %v981_v7, %v2156_v51  ;;  %v988_v14 = vcombine.high %v978_v8, %v978_v8  ;;  %v995_v15 = vrot.slane %v978_v8, %v2156_v51 }
 0x411   :  { %v1005_v59 = vcombine.high %v979_v9, %v979_v9  ;;  %v1012_v62 = vrot.slane %v979_v9, %v2156_v51  ;;  %v1029_v21 = vrot.slane %v980_v10, %v2156_v51  ;;  %v1062_v23 = vrot.slane %v982_v12, %v2156_v51 }
 0x412   :  { %v1053_v1 = vrot.slane %v1039_v2, %v2156_v51  ;;  %v1054_v16 = vcombine.high %v1046_v11, %v1046_v11  ;;  %v1002_v17 = vrot.slane %v988_v14, %v2156_v51  ;;  %v1003_v18 = vcombine.high %v995_v15, %v995_v15  ;;  %v1065_v2 = vld [vmem:[%s2422_s7 + $0x8] sm:$0xf] }
 0x413   :  { %v1019_v19 = vrot.slane %v1005_v59, %v2156_v51  ;;  %v1020_v20 = vcombine.high %v1012_v62, %v1012_v62  ;;  %v1022_v32 = vcombine.high %v980_v10, %v980_v10  ;;  %v1037_v25 = vcombine.high %v1029_v21, %v1029_v21  ;;  %1899 = vmatpush3.msk.msra.mxu0 %vm1415_vm2, %v1065_v2 }
 0x414   :  { %v1055_v22 = vcombine.high %v1053_v1, %v1053_v1  ;;  %v1124_v26 = vcombine.low %v1054_v16, %v1053_v1  ;;  %v1004_v24 = vcombine.high %v1002_v17, %v1002_v17  ;;  %v1066_v28 = vcombine.low %v995_v15, %v1003_v18  ;;  %1900 = vmatprep.subr.mxu0 %v1928_v3  ;;  %v1064_v1 = vld [vmem:[%s2422_s7] sm:$0xff] }
 0x415   :  { %v1021_v27 = vcombine.high %v1019_v19, %v1019_v19  ;;  %v1083_v29 = vcombine.low %v1012_v62, %v1020_v20  ;;  %v1036_v38 = vrot.slane %v1022_v32, %v2156_v51  ;;  %v1106_v42 = vrot.slane %v1029_v21, %v2156_v51  ;;  %1901 = vmatpush3.msra.mxu0 %v1064_v1 }
 0x416   :  { %v1125_v30 = vcombine.low %v1055_v22, %v1062_v23  ;;  %v1067_v31 = vcombine.low %v1002_v17, %v1004_v24  ;;  %v1074_v34 = vrot.slane %v1066_v28, %v2156_v51  ;;  %v1132_v39 = vrot.slane %v1124_v26, %v2156_v51 }
 0x417   :  { %v1084_v35 = vcombine.low %v1019_v19, %v1021_v27  ;;  %v1091_v40 = vrot.slane %v1083_v29, %v2156_v51  ;;  %v1038_v45 = vcombine.high %v1036_v38, %v1036_v38  ;;  %v1107_v33 = vcombine.low %v1037_v25, %v1036_v38 }
 0x418   :  { %v1139_v36 = vrot.slane %v1125_v30, %v2156_v51  ;;  %v1081_v37 = vrot.slane %v1067_v31, %v2156_v51  ;;  %v1063_v52 = vcombine.high %v1062_v23, %v1062_v23  ;;  %v1151_v54 = vrot.slane %v1106_v42, 7 }
 0x419   :  { %v1098_v41 = vrot.slane %v1084_v35, %v2156_v51  ;;  %v1108_v50 = vcombine.low %v1038_v45, %v1046_v11  ;;  %v1115_v56 = vrot.slane %v1107_v33, %v2156_v51 }
 0x41a   :  { %v1082_v44 = vcombine.low %v1074_v34, %v1081_v37  ;;  %v1140_v46 = vcombine.low %v1132_v39, %v1139_v36  ;;  %v1147_v6 = vrot.slane %v1063_v52, %v2156_v51 }
 0x41b   :  { %v1099_v47 = vcombine.low %v1091_v40, %v1098_v41  ;;  %v1122_v57 = vrot.slane %v1108_v50, %v2156_v51 }
 0x41c   :  { %v1148_v48 = vrot.slane %v1082_v44, 7  ;;  %v1154_v58 = vrot.slane %v1140_v46, 7  ;;  %v1156_v15 = vrot.slane %v1147_v6, 7 }
 0x41d   :  { %v1149_v53 = vrot.slane %v1099_v47, 7  ;;  %v1123_v61 = vcombine.low %v1115_v56, %v1122_v57 }
 0x41e   :  { %v1164_v55 = vsel %vm546_vm9, 0.0, %v1148_v48  ;;  %v1157_v20 = vsel %vm546_vm9, %v1154_v58, %v1156_v15 }
 0x41f   :  { %v1150_v43 = vsel %vm546_vm9, %v1148_v48, %v1149_v53  ;;  %v1200_v60 = vrot.slane %v1164_v55, 2  ;;  %v1172_v63 = vrot.slane %v1164_v55, 1  ;;  %v1152_v13 = vsel %vm546_vm9, %v1149_v53, %v1151_v54 }
 0x420   :  { %v1201_v0 = vrot.slane %v1150_v43, 2  ;;  %v1173_v4 = vrot.slane %v1150_v43, 1  ;;  %v2263_v5 = vsel %vm565_vm12, %v1152_v13, 0.0  ;;  %v1153_v12 = vrot.slane %v1123_v61, 7 }
 0x421   :  { %v1203_v7 = vrot.slane %v2263_v5, 2  ;;  %v1175_v8 = vrot.slane %v2263_v5, 1  ;;  %v2295_v23 = vsel %vm565_vm12, %v1157_v20, 0.0 }
 0x422   :  { %v1202_v9 = vsel %vm601_vm11, %v1200_v60, %v1201_v0  ;;  %v1174_v10 = vsel %vm572_vm10, %v1172_v63, %v1173_v4  ;;  %v2276_v11 = vsel %vm546_vm9, %v1153_v12, %v1154_v58  ;;  %v1165_v14 = vsel %vm546_vm9, 0.0, %v1153_v12 }
 0x423   :  { %1210 = vrot.lane.b32.xlu1 %v1202_v9, %s1932_s16  ;;  %1182 = vrot.lane.b32.xlu0 %v1174_v10, %s1931_s3  ;;  %v1204_v59 = vsel %vm601_vm11, %v1201_v0, %v1203_v7  ;;  %v1176_v62 = vsel %vm572_vm10, %v1173_v4, %v1175_v8  ;;  %v1205_v16 = vrot.slane %v1165_v14, 2  ;;  %v1206_v17 = vrot.slane %v2276_v11, 2 }
 0x424   :  { %v1177_v18 = vrot.slane %v1165_v14, 1  ;;  %v1178_v19 = vrot.slane %v2276_v11, 1  ;;  %v1208_v26 = vrot.slane %v2295_v23, 2  ;;  %v1180_v24 = vrot.slane %v2295_v23, 1 }
 0x425   :  { %v1207_v21 = vsel %vm601_vm11, %v1205_v16, %v1206_v17 }
 0x426   :  { %v1179_v22 = vsel %vm572_vm10, %v1177_v18, %v1178_v19  ;;  %v1209_v27 = vsel %vm601_vm11, %v1206_v17, %v1208_v26  ;;  %v1181_v28 = vsel %vm572_vm10, %v1178_v19, %v1180_v24 }
 0x427   :  { %1212 = vrot.lane.b32.xlu1 %v1204_v59, %s1932_s16  ;;  %1184 = vrot.lane.b32.xlu0 %v1176_v62, %s1931_s3 }
 0x42b   :  { %1216 = vrot.lane.b32.xlu1 %v1207_v21, %s1932_s16  ;;  %1188 = vrot.lane.b32.xlu0 %v1179_v22, %s1931_s3 }
 0x42f   :  { %1214 = vrot.lane.b32.xlu1 %v1203_v7, %s1932_s16  ;;  %1186 = vrot.lane.b32.xlu0 %v1175_v8, %s1931_s3 }
 0x433   :  { %1218 = vrot.lane.b32.xlu1 %v1209_v27, %s1932_s16  ;;  %1190 = vrot.lane.b32.xlu0 %v1181_v28, %s1931_s3 }
 0x437   :  { %1220 = vrot.lane.b32.xlu1 %v1208_v26, %s1932_s16  ;;  %1192 = vrot.lane.b32.xlu0 %v1180_v24, %s1931_s3 }
 0x495   :  { %v1211_v29 = vpop.permute.xlu1 %1210  ;;  %v1183_v30 = vpop.permute.xlu0 %1182 }
 0x496   :  { %v1228_v31 = vsel %vm530_vm8, %v1164_v55, %v1183_v30 }
 0x497   :  { %v1234_v32 = vsel %vm45_vm0, %v1228_v31, %v1211_v29 }
 0x498   :  { %v1246_v34 = vcombine.high %v1234_v32, %v1234_v32  ;;  %v1253_v35 = vrot.slane %v1234_v32, %v2156_v51 }
 0x499   :  { %v1213_v25 = vpop.permute.xlu1 %1212  ;;  %v1185_v36 = vpop.permute.xlu0 %1184 }
 0x49a   :  { %v1260_v37 = vrot.slane %v1246_v34, %v2156_v51  ;;  %v1261_v38 = vcombine.high %v1253_v35, %v1253_v35  ;;  %v1229_v39 = vsel %vm530_vm8, %v1150_v43, %v1185_v36 }
 0x49b   :  { %v1235_v40 = vsel %vm45_vm0, %v1229_v39, %v1213_v25 }
 0x49c   :  { %v1262_v41 = vcombine.high %v1260_v37, %v1260_v37  ;;  %v1328_v42 = vcombine.low %v1253_v35, %v1261_v38  ;;  %v1263_v44 = vcombine.high %v1235_v40, %v1235_v40  ;;  %v1270_v45 = vrot.slane %v1235_v40, %v2156_v51 }
 0x49d   :  { %v1217_v33 = vpop.permute.xlu1 %1216  ;;  %v1189_v46 = vpop.permute.xlu0 %1188 }
 0x49e   :  { %v1329_v47 = vcombine.low %v1260_v37, %v1262_v41  ;;  %v1277_v48 = vrot.slane %v1263_v44, %v2156_v51  ;;  %v1278_v50 = vcombine.high %v1270_v45, %v1270_v45  ;;  %v1336_v52 = vrot.slane %v1328_v42, %v2156_v51 }
 0x49f   :  { %v1231_v53 = vsel %vm530_vm8, %v1165_v14, %v1189_v46 }
 0x4a0   :  { %v1343_v54 = vrot.slane %v1329_v47, %v2156_v51  ;;  %v1279_v55 = vcombine.high %v1277_v48, %v1277_v48  ;;  %v1345_v56 = vcombine.low %v1270_v45, %v1278_v50  ;;  %v1237_v57 = vsel %vm45_vm0, %v1231_v53, %v1217_v33 }
 0x4a1   :  { %v1287_v58 = vcombine.high %v1237_v57, %v1237_v57  ;;  %v1294_v43 = vrot.slane %v1237_v57, %v2156_v51  ;;  %v1215_v60 = vpop.permute.xlu1 %1214  ;;  %v1187_v63 = vpop.permute.xlu0 %1186 }
 0x4a2   :  { %v1344_v13 = vcombine.low %v1336_v52, %v1343_v54  ;;  %v1346_v0 = vcombine.low %v1277_v48, %v1279_v55  ;;  %v1230_v4 = vsel %vm530_vm8, %v2263_v5, %v1187_v63  ;;  %v1353_v8 = vrot.slane %v1345_v56, %v2156_v51 }
 0x4a3   :  { %v1301_v61 = vrot.slane %v1287_v58, %v2156_v51  ;;  %v1302_v6 = vcombine.high %v1294_v43, %v1294_v43  ;;  %v1236_v7 = vsel %vm45_vm0, %v1230_v4, %v1215_v60 }
 0x4a4   :  { %v1286_v9 = vrot.slane %v1236_v7, %v2156_v51  ;;  %1903 = vmatmul.mubr.msk.f32.vlgmr.msra.gmra.mxu0 %vm1404_vm3, %v1344_v13  ;;  %v1360_v10 = vrot.slane %v1346_v0, %v2156_v51 }
 0x4a5   :  { %v1363_v12 = vcombine.low %v1302_v6, %v1301_v61  ;;  %v1219_v2 = vpop.permute.xlu1 %1218  ;;  %v1191_v14 = vpop.permute.xlu0 %1190  ;;  %1905 = vmatprep.mubr.msk.f32.mxu0 %vm1929_vm1, %v1928_v3  ;;  %v1303_v16 = vcombine.high %v1301_v61, %v1301_v61 }
 0x4a6   :  { %v1362_v5 = vcombine.low %v1286_v9, %v1294_v43  ;;  %v1232_v15 = vsel %vm530_vm8, %v2276_v11, %v1191_v14  ;;  %v1361_v59 = vcombine.low %v1353_v8, %v1360_v10 }
 0x4a7   :  { %v1238_v62 = vsel %vm45_vm0, %v1232_v15, %v1219_v2  ;;  %v1377_v21 = vrot.slane %v1363_v12, %v2156_v51 }
 0x4a8   :  { %v1370_v1 = vrot.slane %v1362_v5, %v2156_v51  ;;  %v1304_v17 = vcombine.high %v1238_v62, %v1238_v62  ;;  %v1311_v18 = vrot.slane %v1238_v62, %v2156_v51  ;;  %1906 = vmatmul.mubr.msk.f32.gmra.mxu0 %vm1404_vm3, %v1361_v59 }
 0x4a9   :  { %v1221_v19 = vpop.permute.xlu1 %1220  ;;  %v1193_v20 = vpop.permute.xlu0 %1192  ;;  %1908 = vmatprep.mubr.msk.f32.mxu0 %vm1929_vm1, %v1928_v3 }
 0x4aa   :  { %v1318_v11 = vrot.slane %v1304_v17, %v2156_v51  ;;  %v1319_v22 = vcombine.high %v1311_v18, %v1311_v18  ;;  %v1379_v26 = vcombine.low %v1303_v16, %v1311_v18  ;;  %v1233_v24 = vsel %vm530_vm8, %v2295_v23, %v1193_v20 }
 0x4ab   :  { %v1239_v27 = vsel %vm45_vm0, %v1233_v24, %v1221_v19  ;;  %v1378_v28 = vcombine.low %v1370_v1, %v1377_v21  ;;  %vm1753_vm0 = vcmask 25600  }
 0x4ac   :  { %v1380_v29 = vcombine.low %v1319_v22, %v1318_v11  ;;  %v1320_v30 = vcombine.high %v1318_v11, %v1318_v11  ;;  %v1327_v31 = vrot.slane %v1239_v27, %v2156_v51  ;;  %v1387_v32 = vrot.slane %v1379_v26, %v2156_v51  ;;  %v1509_v26 = vld [vmem:[%s2423_s8] sm:$0x1] }
 0x4ad   :  { %1909 = vmatmul.mubr.msk.f32.gmra.mxu0 %vm1404_vm3, %v1378_v28  ;;  %v1510_v28 = vld [vmem:[%s2424_s9] sm:$0x1] }
 0x4ae   :  { %1911 = vmatprep.mubr.msk.f32.mxu0 %vm1929_vm1, %v1928_v3  ;;  %v1394_v34 = vrot.slane %v1380_v29, %v2156_v51  ;;  %v1396_v35 = vcombine.low %v1320_v30, %v1327_v31 }
 0x4b0   :  { %v1395_v25 = vcombine.low %v1387_v32, %v1394_v34  ;;  %v1403_v23 = vrot.slane %v1396_v35, %v2156_v51 }
 0x4b2   :  { %1912 = vmatmul.mubr.msk.f32.gmra.mxu0 %vm1404_vm3, %v1395_v25 }
 0x4b3   :  { %1914 = vmatprep.mubr.msk.f32.mxu0 %vm1929_vm1, %v1928_v3 }
 0x4b6   :  { %1915 = vmatmul.mubr.msk.f32.gmra.mxu0 %vm1404_vm3, %v1403_v23 }
 0x564   :  { %v1485_v36 = vpop.f32.mrf.mxu0 }
 0x565   :  { %v1527_v42 = vmul.f32 %v1485_v36, %v1485_v36  ;;  %v1511_v46 = vsel %vm530_vm8, %v1485_v36, 0.0 }
 0x566   :  { %v1904_v37 = vpop.f32.mrf.mxu0 }
 0x567   :  { %v1532_v52 = vsel %vm530_vm8, %v1527_v42, 0.0 }
 0x568   :  { %v1490_v38 = vpop.f32.mrf.mxu0 }
 0x569   :  { %v1528_v40 = vmul.f32 %v1490_v38, %v1490_v38  ;;  %v1512_v44 = vsel %vm530_vm8, %v1490_v38, 0.0 }
 0x56a   :  { %v1907_v39 = vpop.f32.mrf.mxu0  ;;  %v1513_v48 = vadd.f32 %v1512_v44, %v1511_v46 }
 0x56b   :  { %v1533_v47 = vsel %vm530_vm8, %v1528_v40, 0.0 }
 0x56c   :  { %v1534_v56 = vadd.f32 %v1533_v47, %v1532_v52 }
 0x56d   :  { %v1495_v41 = vpop.f32.mrf.mxu0 }
 0x56e   :  { %v1529_v45 = vmul.f32 %v1495_v41, %v1495_v41  ;;  %v1514_v3 = vsel %vm530_vm8, %v1495_v41, 0.0 }
 0x56f   :  { %v1910_v33 = vpop.f32.mrf.mxu0  ;;  %v1515_v57 = vadd.f32 %v1514_v3, %v1513_v48 }
 0x570   :  { %v1535_v53 = vsel %vm530_vm8, %v1529_v45, 0.0 }
 0x571   :  { %v1536_v60 = vadd.f32 %v1535_v53, %v1534_v56 }
 0x572   :  { %v1500_v50 = vpop.f32.mrf.mxu0 }
 0x573   :  { %v1516_v54 = vsel %vm530_vm8, %v1500_v50, 0.0  ;;  %v1530_v55 = vmul.f32 %v1500_v50, %v1500_v50 }
 0x574   :  { %v1913_v58 = vpop.f32.mrf.mxu0  ;;  %v1517_v63 = vadd.f32 %v1516_v54, %v1515_v57 }
 0x575   :  { %v1537_v43 = vsel %vm530_vm8, %v1530_v55, 0.0 }
 0x576   :  { %v1505_v13 = vpop.f32.mrf.mxu0  ;;  %v1538_v61 = vadd.f32 %v1537_v43, %v1536_v60 }
 0x577   :  { %v1518_v0 = vsel %vm917_vm15, %v1505_v13, 0.0  ;;  %v1531_v4 = vmul.f32 %v1505_v13, %v1505_v13 }
 0x578   :  { %v1519_v6 = vadd.f32 %v1518_v0, %v1517_v63  ;;  %v1916_v7 = vpop.f32.mrf.mxu0 }
 0x579   :  { %v1539_v8 = vsel %vm917_vm15, %v1531_v4, 0.0 }
 0x57a   :  { %v1520_v9 = vrot.slane %v1519_v6, 4  ;;  %v1540_v10 = vadd.f32 %v1539_v8, %v1538_v61 }
 0x57c   :  { %v1521_v12 = vadd.f32 %v1520_v9, %v1519_v6  ;;  %v1541_v2 = vrot.slane %v1540_v10, 4 }
 0x57e   :  { %v1522_v14 = vrot.slane %v1521_v12, 2  ;;  %v1542_v5 = vadd.f32 %v1541_v2, %v1540_v10 }
 0x580   :  { %v1523_v15 = vadd.f32 %v1522_v14, %v1521_v12  ;;  %v1543_v59 = vrot.slane %v1542_v5, 2 }
 0x582   :  { %v1524_v62 = vrot.slane %v1523_v15, 1  ;;  %v1544_v1 = vadd.f32 %v1543_v59, %v1542_v5 }
 0x584   :  { %v1525_v16 = vadd.f32 %v1524_v62, %v1523_v15  ;;  %v1545_v17 = vrot.slane %v1544_v1, 1 }
 0x586   :  { %v1526_v18 = vmul.f32 0.027777778, %v1525_v16  ;;  %v1546_v19 = vadd.f32 %v1545_v17, %v1544_v1 }
 0x588   :  { %v1547_v20 = vmul.f32 0.027777778, %v1546_v19  ;;  %v1548_v21 = vmul.f32 %v1526_v18, %v1526_v18 }
 0x58a   :  { %v1549_v11 = vsub.f32 %v1547_v20, %v1548_v21 }
 0x58c   :  { %v1550_v22 = vadd.f32 1e-05, %v1549_v11 }
 0x58e   :  { %1926 = vrsqrt.f32 %v1550_v22 }
 0x59b   :  { %v1927_v24 = vpop.eup %1926 }
 0x59c   :  { %v1552_v27 = vmul.f32 %v1927_v24, %v1509_v26 }
 0x59e   :  { %v1553_v29 = vmul.f32 %v1552_v27, %v1526_v18  ;;  %v1559_v30 = vrot.slane %v1552_v27, %v2232_v49 }
 0x5a0   :  { %v1554_v31 = vsub.f32 %v1510_v28, %v1553_v29  ;;  %v1561_v32 = vmul.f32 %v1559_v30, %v1485_v36  ;;  %v1562_v34 = vmul.f32 %v1559_v30, %v1490_v38  ;;  %v1563_v35 = vmul.f32 %v1559_v30, %v1495_v41 }
 0x5a1   :  { %v1564_v25 = vmul.f32 %v1559_v30, %v1500_v50  ;;  %v1565_v37 = vmul.f32 %v1559_v30, %v1505_v13 }
 0x5a2   :  { %v1570_v23 = vrot.slane %v1554_v31, %v2232_v49 }
 0x5a4   :  { %v1572_v39 = vadd.f32 %v1570_v23, %v1561_v32  ;;  %v1573_v40 = vadd.f32 %v1570_v23, %v1562_v34  ;;  %v1574_v42 = vadd.f32 %v1570_v23, %v1563_v35  ;;  %v1575_v44 = vadd.f32 %v1570_v23, %v1564_v25 }
 0x5a5   :  { %v1576_v45 = vadd.f32 %v1570_v23, %v1565_v37 }
 0x5a6   :  { %v1577_v33 = vmax.f32 %v1572_v39, 0.0  ;;  %v1578_v46 = vmax.f32 %v1573_v40, 0.0  ;;  %v1579_v47 = vmax.f32 %v1574_v42, 0.0  ;;  %v1580_v3 = vmax.f32 %v1575_v44, 0.0 }
 0x5a7   :  { %v1581_v48 = vmax.f32 %v1576_v45, 0.0 }
 0x5a8   :  { %v1587_v52 = vcombine.high %v1577_v33, %v1577_v33  ;;  %v1594_v36 = vrot.slane %v1577_v33, %v2156_v51  ;;  %v1604_v38 = vcombine.high %v1578_v46, %v1578_v46  ;;  %v1611_v41 = vrot.slane %v1578_v46, %v2156_v51 }
 0x5a9   :  { %v1621_v50 = vcombine.high %v1579_v47, %v1579_v47  ;;  %v1628_v49 = vrot.slane %v1579_v47, %v2156_v51  ;;  %v1638_v53 = vcombine.high %v1580_v3, %v1580_v3  ;;  %v1645_v54 = vrot.slane %v1580_v3, %v2156_v51 }
 0x5aa   :  { %v1601_v55 = vrot.slane %v1587_v52, %v2156_v51  ;;  %v1602_v56 = vcombine.high %v1594_v36, %v1594_v36  ;;  %v1618_v57 = vrot.slane %v1604_v38, %v2156_v51  ;;  %v1619_v58 = vcombine.high %v1611_v41, %v1611_v41 }
 0x5ab   :  { %v1635_v43 = vrot.slane %v1621_v50, %v2156_v51  ;;  %v1636_v60 = vcombine.high %v1628_v49, %v1628_v49  ;;  %v1652_v63 = vrot.slane %v1638_v53, %v2156_v51  ;;  %v1653_v13 = vcombine.high %v1645_v54, %v1645_v54 }
 0x5ac   :  { %v1603_v0 = vcombine.high %v1601_v55, %v1601_v55  ;;  %v1620_v4 = vcombine.high %v1618_v57, %v1618_v57  ;;  %v1661_v61 = vrot.slane %v1581_v48, %v2156_v51  ;;  %v1663_v6 = vcombine.low %v1594_v36, %v1602_v56 }
 0x5ad   :  { %v1637_v7 = vcombine.high %v1635_v43, %v1635_v43  ;;  %v1654_v8 = vcombine.high %v1652_v63, %v1652_v63  ;;  %v1680_v9 = vcombine.low %v1611_v41, %v1619_v58  ;;  %v1703_v10 = vrot.slane %v1628_v49, %v2156_v51 }
 0x5ae   :  { %v1662_v12 = vcombine.high %v1661_v61, %v1661_v61  ;;  %v1664_v2 = vcombine.low %v1601_v55, %v1603_v0  ;;  %v1671_v14 = vrot.slane %v1663_v6, %v2156_v51  ;;  %v1681_v5 = vcombine.low %v1618_v57, %v1620_v4 }
 0x5af   :  { %v1688_v15 = vrot.slane %v1680_v9, %v2156_v51  ;;  %v1704_v59 = vcombine.low %v1636_v60, %v1635_v43  ;;  %v1705_v62 = vcombine.low %v1637_v7, %v1645_v54  ;;  %v1721_v1 = vcombine.low %v1653_v13, %v1652_v63  ;;  %1754 = vst.msk [vmem:[%s2425_s10 + $0x10] sm:$0x3] %vm1753_vm0, %v1703_v10 }
 0x5b0   :  { %v1678_v16 = vrot.slane %v1664_v2, %v2156_v51  ;;  %v1695_v17 = vrot.slane %v1681_v5, %v2156_v51  ;;  %v1722_v18 = vcombine.low %v1654_v8, %v1661_v61  ;;  %v1744_v19 = vrot.slane %v1662_v12, %v2156_v51 }
 0x5b1   :  { %v1712_v20 = vrot.slane %v1704_v59, %v2156_v51  ;;  %v1719_v21 = vrot.slane %v1705_v62, %v2156_v51  ;;  %v1729_v26 = vrot.slane %v1721_v1, %v2156_v51 }
 0x5b2   :  { %v1679_v11 = vcombine.low %v1671_v14, %v1678_v16  ;;  %v1696_v22 = vcombine.low %v1688_v15, %v1695_v17  ;;  %v1736_v24 = vrot.slane %v1722_v18, %v2156_v51  ;;  %1757 = vst.msk [vmem:[%s2425_s10 + $0x28] sm:$0x3] %vm1753_vm0, %v1744_v19 }
 0x5b3   :  { %v1720_v27 = vcombine.low %v1712_v20, %v1719_v21 }
 0x5b4   :  { %v1737_v28 = vcombine.low %v1729_v26, %v1736_v24  ;;  %1751 = vst.msk [vmem:[%s2425_s10] sm:$0xff] %vm530_vm8, %v1679_v11  ;;  %1752 = vst.msk [vmem:[%s2425_s10 + $0x8] sm:$0xff] %vm530_vm8, %v1696_v22 }
 0x5b5   :  { %1755 = vst.msk [vmem:[%s2425_s10 + $0x18] sm:$0xff] %vm530_vm8, %v1720_v27 }
 0x5b6   :  { %1756 = vst.msk [vmem:[%s2425_s10 + $0x20] sm:$0xff] %vm530_vm8, %v1737_v28 }

</bundles_post_ra>
